<compile_context>
chip_gen: v6e
topology: v6e:2x2x1
jax: 0.10.0
libtpu: 0.0.40
codegen_flags: <defaults>
</compile_context>

<pallas_src>
import functools

import jax
import jax.numpy as jnp
from jax.experimental import pallas as pl
from jax.experimental.pallas import tpu as pltpu


def _round_up(x: int, m: int) -> int:
    return (x + m - 1) // m * m


def _quantile_loss_kernel(preds_ref, target_ref, q_ref, o_ref, *, inv_batch):
    pid = pl.program_id(0)

    @pl.when(pid == 0)
    def _init():
        o_ref[...] = jnp.zeros_like(o_ref)

    errors = target_ref[...] - preds_ref[...]          # (tile_b, nq)  f32
    q = q_ref[...]                                     # (1, nq) broadcast row
    pinball = jnp.maximum((q - 1.0) * errors, q * errors)
    o_ref[...] = o_ref[...] + jnp.sum(pinball)

    @pl.when(pid == pl.num_programs(0) - 1)
    def _finalize():
        o_ref[...] = o_ref[...] * inv_batch


def quantile_loss(preds, target, quantiles, *, tile_b=1024):
    """Pallas TPU equivalent of QuantileLoss(quantiles).forward(preds, target)."""
    batch, nq = preds.shape
    assert target.shape[0] == batch

    # Tile rows must be a multiple of 8 (f32 sublane packing).
    tile_b = _round_up(min(tile_b, _round_up(batch, 8)), 8)
    batch_pad = _round_up(batch, tile_b)
    pad_rows = batch_pad - batch

    preds_p = jnp.pad(preds.astype(jnp.float32), ((0, pad_rows), (0, 0)))
    target_p = jnp.pad(
        target.astype(jnp.float32).reshape(batch, 1), ((0, pad_rows), (0, 0))
    )
    q_vec = jnp.asarray(quantiles, jnp.float32).reshape(1, nq)

    grid = (batch_pad // tile_b,)
    kernel = functools.partial(_quantile_loss_kernel, inv_batch=1.0 / batch)

    out = pl.pallas_call(
        kernel,
        out_shape=jax.ShapeDtypeStruct((1, 1), jnp.float32),
        grid=grid,
        in_specs=[
            pl.BlockSpec((tile_b, nq), lambda i: (i, 0)),   # streamed preds tiles
            pl.BlockSpec((tile_b, 1), lambda i: (i, 0)),    # streamed target tiles
            pl.BlockSpec((1, nq), lambda i: (0, 0)),        # resident quantile row
        ],
        out_specs=pl.BlockSpec((1, 1), lambda i: (0, 0)),   # resident accumulator
        compiler_params=pltpu.CompilerParams(
            # The scalar accumulator is carried across the batch grid axis,
            # so this axis must be a sequential reduction ("arbitrary").
            dimension_semantics=("arbitrary",),
        ),
    )(preds_p, target_p, q_vec)
    return out[0, 0]


def reference_quantile_loss(preds, target, quantiles):
    q = jnp.asarray(quantiles, jnp.float32)[None, :]
    errors = target.astype(jnp.float32)[:, None] - preds.astype(jnp.float32)
    losses = jnp.maximum((q - 1.0) * errors, q * errors)
    return jnp.mean(jnp.sum(losses, axis=1))


if __name__ == "__main__":
    quantiles = [0.1, 0.5, 0.9]

    key = jax.random.PRNGKey(0)
    kp, kt, kp2, kt2 = jax.random.split(key, 4)

    # Small case: single grid step.
    batch = 8
    preds = jax.random.normal(kp, (batch, len(quantiles)), jnp.float32)
    target = jax.random.normal(kt, (batch,), jnp.float32)
    loss = jax.block_until_ready(quantile_loss(preds, target, quantiles))
    ref = reference_quantile_loss(preds, target, quantiles)
    assert loss.shape == ()
    assert jnp.allclose(loss, ref, atol=1e-5, rtol=1e-5), (loss, ref)

    # Multi-tile case: exercises grid accumulation + batch padding (40 -> 48 rows).
    batch2 = 40
    preds2 = jax.random.normal(kp2, (batch2, len(quantiles)), jnp.float32)
    target2 = jax.random.normal(kt2, (batch2,), jnp.float32)
    loss2 = jax.block_until_ready(
        quantile_loss(preds2, target2, quantiles, tile_b=16)
    )
    ref2 = reference_quantile_loss(preds2, target2, quantiles)
    assert jnp.allclose(loss2, ref2, atol=1e-5, rtol=1e-5), (loss2, ref2)

    print("KERNEL_OK")
</pallas_src>

<mosaic_0001>
module attributes {stable_mosaic.version = 11 : i64} {
  func.func @_quantile_loss_kernel(%arg0: i32, %arg1: memref<8x3xf32, #tpu.memory_space<vmem>>, %arg2: memref<8x1xf32, #tpu.memory_space<vmem>>, %arg3: memref<1x3xf32, #tpu.memory_space<vmem>>, %arg4: memref<1x1xf32, #tpu.memory_space<vmem>>) attributes {dimension_semantics = [#tpu.dimension_semantics<arbitrary>], iteration_bounds = array<i64: 1>, scalar_prefetch = 0 : i64, scratch_operands = 0 : i64, tpu.core_type = #tpu.core_type<tc>, window_params = [{transform_indices = @transform_0, window_bounds = array<i64: 8, 3>}, {transform_indices = @transform_1, window_bounds = array<i64: 8, 1>}, {pipeline_mode = #tpu.pipeline_mode<synchronous>, transform_indices = @transform_2, window_bounds = array<i64: 1, 3>}, {pipeline_mode = #tpu.pipeline_mode<synchronous>, transform_indices = @transform_3, window_bounds = array<i64: 1, 1>}]} {
    %c0_i32 = arith.constant 0 : i32
    %0 = arith.cmpi eq, %arg0, %c0_i32 : i32
    %1 = arith.extui %0 : i1 to i32
    %c0_i32_0 = arith.constant 0 : i32
    %2 = arith.cmpi ne, %1, %c0_i32_0 : i32
    scf.if %2 {
      %cst_13 = arith.constant 0.000000e+00 : f32
      %26 = vector.broadcast %cst_13 : f32 to vector<1x1xf32>
      %c0_14 = arith.constant 0 : index
      %c0_15 = arith.constant 0 : index
      %27 = vector.load %arg4[%c0_14, %c0_15] : memref<1x1xf32, #tpu.memory_space<vmem>>, vector<1x1xf32>
      tpu.vector_store %arg4[%c0_14, %c0_15], %26 {strides = array<i32>} : memref<1x1xf32, #tpu.memory_space<vmem>>, vector<1x1xf32>,
    } else {
    }
    %c0 = arith.constant 0 : index
    %c0_1 = arith.constant 0 : index
    %3 = vector.load %arg2[%c0, %c0_1] : memref<8x1xf32, #tpu.memory_space<vmem>>, vector<8x1xf32>
    %c0_2 = arith.constant 0 : index
    %c0_3 = arith.constant 0 : index
    %4 = vector.load %arg1[%c0_2, %c0_3] : memref<8x3xf32, #tpu.memory_space<vmem>>, vector<8x3xf32>
    %5 = vector.broadcast %3 : vector<8x1xf32> to vector<8x3xf32>
    %6 = arith.subf %5, %4 : vector<8x3xf32>
    %c0_4 = arith.constant 0 : index
    %c0_5 = arith.constant 0 : index
    %7 = vector.load %arg3[%c0_4, %c0_5] : memref<1x3xf32, #tpu.memory_space<vmem>>, vector<1x3xf32>
    %cst = arith.constant 1.000000e+00 : f32
    %8 = vector.broadcast %cst : f32 to vector<1x3xf32>
    %9 = arith.subf %7, %8 : vector<1x3xf32>
    %10 = vector.broadcast %9 : vector<1x3xf32> to vector<8x3xf32>
    %11 = arith.mulf %10, %6 : vector<8x3xf32>
    %12 = vector.broadcast %7 : vector<1x3xf32> to vector<8x3xf32>
    %13 = arith.mulf %12, %6 : vector<8x3xf32>
    %14 = arith.maximumf %11, %13 : vector<8x3xf32>
    %c0_6 = arith.constant 0 : index
    %c0_7 = arith.constant 0 : index
    %15 = vector.load %arg4[%c0_6, %c0_7] : memref<1x1xf32, #tpu.memory_space<vmem>>, vector<1x1xf32>
    %16 = vector.shape_cast %14 : vector<8x3xf32> to vector<1x8x3xf32>
    %cst_8 = arith.constant dense<0.000000e+00> : vector<1xf32>
    %17 = vector.multi_reduction <add>, %16, %cst_8 [1, 2] : vector<1x8x3xf32> to vector<1xf32>
    %18 = vector.shape_cast %17 : vector<1xf32> to vector<1x1x1xf32>
    %19 = vector.extract %18[0, 0, 0] : f32 from vector<1x1x1xf32>
    %20 = vector.broadcast %19 : f32 to vector<1x1xf32>
    %21 = arith.addf %15, %20 : vector<1x1xf32>
    %c0_9 = arith.constant 0 : index
    %c0_10 = arith.constant 0 : index
    %22 = vector.load %arg4[%c0_9, %c0_10] : memref<1x1xf32, #tpu.memory_space<vmem>>, vector<1x1xf32>
    tpu.vector_store %arg4[%c0_9, %c0_10], %21 {strides = array<i32>} : memref<1x1xf32, #tpu.memory_space<vmem>>, vector<1x1xf32>,
    %c0_i32_11 = arith.constant 0 : i32
    %23 = arith.cmpi eq, %arg0, %c0_i32_11 : i32
    %24 = arith.extui %23 : i1 to i32
    %c0_i32_12 = arith.constant 0 : i32
    %25 = arith.cmpi ne, %24, %c0_i32_12 : i32
    scf.if %25 {
      %c0_13 = arith.constant 0 : index
      %c0_14 = arith.constant 0 : index
      %26 = vector.load %arg4[%c0_13, %c0_14] : memref<1x1xf32, #tpu.memory_space<vmem>>, vector<1x1xf32>
      %cst_15 = arith.constant 1.250000e-01 : f32
      %27 = vector.broadcast %cst_15 : f32 to vector<1x1xf32>
      %28 = arith.mulf %26, %27 : vector<1x1xf32>
      %c0_16 = arith.constant 0 : index
      %c0_17 = arith.constant 0 : index
      %29 = vector.load %arg4[%c0_16, %c0_17] : memref<1x1xf32, #tpu.memory_space<vmem>>, vector<1x1xf32>
      tpu.vector_store %arg4[%c0_16, %c0_17], %28 {strides = array<i32>} : memref<1x1xf32, #tpu.memory_space<vmem>>, vector<1x1xf32>,
    } else {
    }
    return
  }
  func.func @transform_0(%arg0: i32) -> (i32, i32) {
    %c0_i32 = arith.constant 0 : i32
    %c0_i32_0 = arith.constant 0 : i32
    return %arg0, %c0_i32 : i32, i32
  }
  func.func @transform_1(%arg0: i32) -> (i32, i32) {
    %c0_i32 = arith.constant 0 : i32
    %c0_i32_0 = arith.constant 0 : i32
    return %arg0, %c0_i32 : i32, i32
  }
  func.func @transform_2(%arg0: i32) -> (i32, i32) {
    %c0_i32 = arith.constant 0 : i32
    %c0_i32_0 = arith.constant 0 : i32
    %c0_i32_1 = arith.constant 0 : i32
    return %c0_i32, %c0_i32_0 : i32, i32
  }
  func.func @transform_3(%arg0: i32) -> (i32, i32) {
    %c0_i32 = arith.constant 0 : i32
    %c0_i32_0 = arith.constant 0 : i32
    %c0_i32_1 = arith.constant 0 : i32
    return %c0_i32, %c0_i32_0 : i32, i32
  }
}

</mosaic_0001>

<bundles_post_ra>
// kernel: tpu_custom_call.1
= control target key start
LH: loop header
LB: loop body
LE: loop exit
PB: predicated region body
PF: predicated region fallthrough
CT: control target
= control target key end

     0   :  { %v111_v1 = vmov 0   ;;  %s149_s0 = inlined_call_operand.vmem [shape: f32[8,3], index: 0, kind: input, shape index: {}]   ;;  %s150_s1 = inlined_call_operand.vmem [shape: f32[8,1], index: 1, kind: input, shape index: {}]   ;;  %s151_s2 = inlined_call_operand.vmem [shape: f32[1,3], index: 2, kind: input, shape index: {}]   ;;  %s152_s3 = inlined_call_operand.hbm [shape: f32[1,1], index: 3, kind: output, shape index: {}]  }
   0x1   :  { %v21_v0 = vld [vmem:[%s150_s1] sm:$0xff]  ;;  %88 = vset.pattern.permute.xlu0 %v111_v1 }
   0x2   :  { %8 = vsyncpa [#allocation3], 0  ;;  %25 = vperm.xlu0 %88, %v21_v0   ;;  %v32_v2 = vlaneseq  ;;  %v29_v4 = vld [vmem:[%s151_s2] sm:$0x1]  ;;  %vm47_vm0 = vcmask 23552   ;;  %vm19_vm1 = vcmask 0  }
   0x3   :  { %v82_v5 = vadd.f32 -1.0, %v29_v4  ;;  %v22_v7 = vld [vmem:[%s149_s0] sm:$0xff]  ;;  %v112_v16 = vmov 0.0   ;;  %s113_s1 = smov [#allocation2]  }
   0x4   :  { %v33_v3 = vshrl.u32 %v32_v2, 7  ;;  %20 = vst.msk [vmem:[#allocation2] sm:$0x1] %vm19_vm1, %v112_v16  ;;  %s74_s2 = sshll.u32 %s113_s1, 4  ;;  %s75_s2 = int_to_ptr.vmem [resolvable:$true] %s74_s2 }
   0x5   :  { %s89_s18 = scalar_lea.vmem %s75_s2, 16  ;;  %s93_s19 = scalar_lea.vmem %s75_s2, 32 }
   0x6   :  { %v34_v6 = vsub.s32 0, %v33_v3  ;;  %p90_p0 = scmp.ne.s32.totalorder %s75_s2, %s89_s18  ;;  %p94_p1 = scmp.lt.s32.totalorder %s75_s2, %s75_s2 }
   0x7   :  { %p95_p2 = scmp.lt.s32.totalorder %s93_s19, %s89_s18 }
   0x8   :  { %v35_v8 = vrot.slane %v82_v5, %v34_v6  ;;  %v42_v9 = vrot.slane %v29_v4, %v34_v6 }
   0x9   :  { %p96_p3 = por %p95_p2, %p94_p1 }
   0xb   :  { %v46_v24 = vld [vmem:[#allocation2] sm:$0x1]  ;;  %p97_p4 = pnand %p96_p3, %p90_p0 }
  0x7d   :  { %v26_v10 = vpop.permute.xlu0 %25 }
  0x7e   :  { %v28_v11 = vsub.f32 %v26_v10, %v22_v7 }
  0x80   :  { %v37_v12 = vmul.f32 %v35_v8, %v28_v11  ;;  %v44_v13 = vmul.f32 %v42_v9, %v28_v11 }
  0x82   :  { %v45_v14 = vmax.f32 %v37_v12, %v44_v13 }
  0x84   :  { %v48_v15 = vsel %vm47_vm0, %v45_v14, 0.0 }
  0x85   :  { %49 = vadd.xlane.f32.xlu0 %v48_v15 }
 0x10e   :  { %v50_v17 = vpop.xlane.xlu0 %49 }
 0x10f   :  { %v51_v18 = vrot.slane %v50_v17, 4 }
 0x111   :  { %v52_v19 = vadd.f32 %v51_v18, %v50_v17 }
 0x113   :  { %v53_v20 = vrot.slane %v52_v19, 2 }
 0x115   :  { %v54_v21 = vadd.f32 %v53_v20, %v52_v19 }
 0x117   :  { %v55_v22 = vrot.slane %v54_v21, 1 }
 0x119   :  { %v56_v23 = vadd.f32 %v55_v22, %v54_v21 }
 0x11b   :  { %83 = vpush %v56_v23 }
 0x14c   :  { %s84_s0 = spop %83 }
 0x14d   :  { %v58_v25 = vstv %s84_s0 }
 0x14e   :  { %v59_v26 = vadd.f32 %v58_v25, %v46_v24 }
 0x150   :  { %61 = vst.msk [vmem:[#allocation2] sm:$0x1] %vm19_vm1, %v59_v26 }
 0x157   :  { %v65_v27 = vld [vmem:[#allocation2] sm:$0x1] }
 0x158   :  { %v66_v28 = vmul.f32 0.125, %v65_v27 }
 0x15a   :  { %67 = vst.msk [vmem:[#allocation2] sm:$0x1] %vm19_vm1, %v66_v28 }
 0x15b   :  { %100 = shalt.err (!%p97_p4)
}
 0x15c   :  { %77 = dma.vmem_to_hbm [thread:$0]  %s75_s2, 16, %s152_s3, [#allocation3]  }
 0x15d   :  { %109 = dma.done.wait [#allocation3], 16  }
 0x15e   :  { %110 = vsyncadd [#allocation3], 4294967280 }
 0x15f   :  { %81 = vsyncpa [#allocation3], 1 }

</bundles_post_ra>
